<compile_context>
chip_gen: v6e
topology: v6e:2x2x1
jax: 0.10.0
libtpu: 0.0.40
codegen_flags: <defaults>
</compile_context>

<pallas_src>
import functools

import jax
import jax.numpy as jnp
from jax.experimental import pallas as pl
from jax.experimental.pallas import tpu as pltpu


_MIN_SPLIT_BLOCK_BYTES = 512 * 1024   # smallest per-input block worth splitting into
_TARGET_STEPS = 4                     # >=2 for pipelining; even so both v7x TCs work
_F32_TILES_LIVE = 6                   # live f32 intermediates per tile (two-pass form)


def _pearson_kernel(x_ref, y_ref, o_ref, *, eps, n, reduce_axis):
    # x_ref / y_ref: (tile_b, N) for reduce_axis=1, (B, tile_n) for reduce_axis=0.
    # o_ref: (1, tile) lane-dense row of correlation coefficients.
    x = x_ref[...].astype(jnp.float32)
    y = y_ref[...].astype(jnp.float32)

    inv_n = jnp.float32(1.0 / n)
    mean_x = jnp.sum(x, axis=reduce_axis, keepdims=True) * inv_n
    mean_y = jnp.sum(y, axis=reduce_axis, keepdims=True) * inv_n

    # Two-pass (centered) form: matches the PyTorch module and is robust to
    # large-mean / small-variance inputs.
    vx = x - mean_x
    vy = y - mean_y

    num = jnp.sum(vx * vy, axis=reduce_axis)     # (tile,)
    ss_x = jnp.sum(vx * vx, axis=reduce_axis)    # (tile,)
    ss_y = jnp.sum(vy * vy, axis=reduce_axis)    # (tile,)
    denom = jnp.sqrt(ss_x * ss_y) + jnp.float32(eps)

    corr = num * pl.reciprocal(denom, approx=False)
    # Lane-dense store: one (1, tile) row per grid step.
    o_ref[...] = corr.reshape(o_ref.shape).astype(o_ref.dtype)


def _sublane_multiple(*dtypes):
    """Sublane packing multiple: 8 for f32, 16 for bf16, 32 for 8-bit types."""
    mult = 8
    for dt in dtypes:
        itemsize = jnp.dtype(dt).itemsize
        if itemsize < 4:
            mult = max(mult, 8 * (4 // itemsize))
    return mult


def _vmem_limit_bytes():
    """Scoped-VMEM limit derived from the chip's physical VMEM."""
    cap = None
    try:
        cap = int(pltpu.get_tpu_info().vmem_capacity_bytes)
    except Exception:
        cap = None
    if not cap or cap <= 0:
        cap = 64 * 1024 * 1024           # conservative fallback: v7x per-TC VMEM
    if cap >= 100 * 1024 * 1024:
        return 96 * 1024 * 1024          # v5e / v6e (128 MiB physical)
    return 48 * 1024 * 1024              # v7x (64 MiB physical)


def _pick_tile(total, reduce_len, itemsize, budget_bytes, pref_mult, min_mult):
    """Tile size along the tiled (non-reduced) dim of length `total`."""
    if total <= min_mult:
        return total                      # can't split legally; single full block
    mult = pref_mult if total > pref_mult else min_mult
    groups = pl.cdiv(total, mult)

    # VMEM footprint of one `mult`-wide slab of the tiled dim:
    #   2 inputs x 2 pipeline buffers (input dtype) + ~6 tile-sized f32 intermediates.
    slab_in = mult * reduce_len * itemsize
    slab_foot = 4 * slab_in + _F32_TILES_LIVE * mult * reduce_len * 4
    cap_groups = max(1, budget_bytes // max(1, slab_foot))

    # Don't split below ~512 KiB per input block: per-step overhead beats overlap.
    floor_groups = min(max(1, _MIN_SPLIT_BLOCK_BYTES // max(1, slab_in)), cap_groups)

    min_steps = pl.cdiv(groups, cap_groups)            # VMEM forces at least this many
    max_steps = max(1, groups // floor_groups)          # keep blocks above the floor
    steps = min(max(_TARGET_STEPS, min_steps), max(max_steps, min_steps))
    steps = min(steps, groups)
    if steps > 1 and steps % 2:                          # even steps for v7x's two TCs
        steps = steps + 1 if steps + 1 <= groups else steps - 1
    steps = max(steps, min_steps)                        # never exceed the VMEM budget

    tile = min(pl.cdiv(groups, steps), cap_groups) * mult
    return total if tile >= total else tile


def pearson_correlation(x, y, *, axis=1, eps=1e-4, tile=None):
    """Pearson correlation of x and y reduced over `axis`.

    Matches PearsonCorrelation(axis, eps).forward(x, y) for 2-D inputs.
    """
    x = jnp.asarray(x)
    y = jnp.asarray(y)
    assert x.ndim == 2 and x.shape == y.shape
    if axis not in (0, 1):
        raise ValueError("Only 2-D inputs with axis in {0, 1} are supported.")

    B, N = x.shape
    out_dtype = jnp.result_type(x.dtype, y.dtype)
    if not jnp.issubdtype(out_dtype, jnp.floating):
        out_dtype = jnp.float32

    if axis == 1:
        reduce_axis, tiled_len, reduce_len = 1, B, N   # tile rows, reduce over lanes
    else:
        reduce_axis, tiled_len, reduce_len = 0, N, B   # tile columns, reduce over sublanes

    itemsize = max(jnp.dtype(x.dtype).itemsize, jnp.dtype(y.dtype).itemsize)
    sub_mult = _sublane_multiple(x.dtype, y.dtype)
    min_mult = 128 if reduce_axis == 0 else sub_mult   # lane dim must tile at 128
    vmem_limit = _vmem_limit_bytes()

    if tile is None:
        tile = _pick_tile(tiled_len, reduce_len, itemsize,
                          budget_bytes=vmem_limit // 2,
                          pref_mult=128, min_mult=min_mult)
    tile = int(tile)
    if tile < tiled_len:
        # Multi-block: tiled dim must respect lane (axis=0) / sublane (axis=1) packing.
        tile = max(min_mult, (tile // min_mult) * min_mult)
    if tile >= tiled_len:
        tile = tiled_len                                # single full block

    num_tiles = pl.cdiv(tiled_len, tile)                # unpadded; last block may be partial

    if reduce_axis == 1:
        def make_in_spec():
            return pl.BlockSpec((tile, N), lambda i: (i, 0))
    else:
        def make_in_spec():
            return pl.BlockSpec((B, tile), lambda i: (0, i))

    cost = pl.CostEstimate(
        flops=10 * B * N,
        transcendentals=2 * tiled_len,
        bytes_accessed=2 * B * N * itemsize + tiled_len * 4,
    )

    out = pl.pallas_call(
        functools.partial(_pearson_kernel, eps=eps, n=reduce_len,
                          reduce_axis=reduce_axis),
        out_shape=jax.ShapeDtypeStruct((num_tiles, tile), jnp.float32),
        grid=(num_tiles,),
        in_specs=[make_in_spec(), make_in_spec()],
        out_specs=pl.BlockSpec((1, tile), lambda i: (i, 0)),
        compiler_params=pltpu.CompilerParams(
            dimension_semantics=("parallel",),
            vmem_limit_bytes=vmem_limit,
        ),
        cost_estimate=cost,
    )(x, y)

    # Tail rows/cols of a partial last block are computed on unspecified data
    # (independent per output element); the slice below discards them.
    return out.reshape(num_tiles * tile)[:tiled_len].astype(out_dtype)


def _pearson_reference(x, y, axis, eps):
    x = x.astype(jnp.float32)
    y = y.astype(jnp.float32)
    vx = x - jnp.mean(x, axis=axis, keepdims=True)
    vy = y - jnp.mean(y, axis=axis, keepdims=True)
    num = jnp.sum(vx * vy, axis=axis)
    denom = jnp.sqrt(jnp.sum(vx**2, axis=axis)) * jnp.sqrt(jnp.sum(vy**2, axis=axis)) + eps
    return num / denom


if __name__ == "__main__":
    # Doctest example from the PyTorch module.
    x_small = jnp.array([[1.0, 2.0, 3.0], [4.0, 5.0, 6.0]], dtype=jnp.float32)
    y_small = jnp.array([[1.1, 2.0, 3.2], [4.1, 5.0, 6.2]], dtype=jnp.float32)
    out_small = jax.block_until_ready(pearson_correlation(x_small, y_small, axis=1, eps=1e-4))
    assert out_small.shape == (2,)
    assert jnp.allclose(out_small, jnp.array([0.9966, 0.9966]), atol=1e-3), out_small

    key = jax.random.PRNGKey(0)
    k1, k2, k3, k4 = jax.random.split(key, 4)

    # Shapes from the module docstring: [5, 174], axis=1 and axis=0.
    x = jax.random.uniform(k1, (5, 174), dtype=jnp.float32)
    y = jax.random.uniform(k2, (5, 174), dtype=jnp.float32)

    out_ax1 = jax.block_until_ready(pearson_correlation(x, y, axis=1, eps=1e-4))
    ref_ax1 = _pearson_reference(x, y, axis=1, eps=1e-4)
    assert out_ax1.shape == (5,)
    assert jnp.allclose(out_ax1, ref_ax1, atol=1e-5, rtol=1e-5)

    out_ax0 = jax.block_until_ready(pearson_correlation(x, y, axis=0, eps=1e-4))
    ref_ax0 = _pearson_reference(x, y, axis=0, eps=1e-4)
    assert out_ax0.shape == (174,)
    assert jnp.allclose(out_ax0, ref_ax0, atol=1e-5, rtol=1e-5)

    # axis=0 with a forced 128-wide column tile: exercises the multi-step grid and
    # the unpadded partial last block on the no-transpose (sublane-reduce) path.
    out_ax0_t = jax.block_until_ready(pearson_correlation(x, y, axis=0, eps=1e-4, tile=128))
    assert out_ax0_t.shape == (174,)
    assert jnp.allclose(out_ax0_t, ref_ax0, atol=1e-5, rtol=1e-5)

    # Ragged batch with a forced small row tile: multi-step grid, partial last block,
    # lane-dense output path on the axis=1 (lane-reduce) kernel.
    xr = jax.random.normal(k3, (37, 200), dtype=jnp.float32)
    yr = 0.5 * xr + jax.random.normal(k4, (37, 200), dtype=jnp.float32)
    out_r = jax.block_until_ready(pearson_correlation(xr, yr, axis=1, eps=1e-4, tile=16))
    ref_r = _pearson_reference(xr, yr, axis=1, eps=1e-4)
    assert out_r.shape == (37,)
    assert jnp.allclose(out_r, ref_r, atol=1e-5, rtol=1e-5)

    # bf16 inputs: itemsize-aware tiling and output cast back to the input dtype.
    xb = xr.astype(jnp.bfloat16)
    yb = yr.astype(jnp.bfloat16)
    out_b = jax.block_until_ready(pearson_correlation(xb, yb, axis=1, eps=1e-4))
    ref_b = _pearson_reference(xb, yb, axis=1, eps=1e-4)
    assert out_b.dtype == jnp.bfloat16
    assert jnp.allclose(out_b.astype(jnp.float32), ref_b, atol=1e-2, rtol=1e-2)

    print("KERNEL_OK")
</pallas_src>

<mosaic_0001>
module attributes {stable_mosaic.version = 11 : i64} {
  func.func @_pearson_kernel(%arg0: i32, %arg1: memref<2x3xf32, #tpu.memory_space<vmem>>, %arg2: memref<2x3xf32, #tpu.memory_space<vmem>>, %arg3: memref<1x2xf32, #tpu.memory_space<vmem>>) attributes {dimension_semantics = [#tpu.dimension_semantics<parallel>], iteration_bounds = array<i64: 1>, scalar_prefetch = 0 : i64, scratch_operands = 0 : i64, tpu.core_type = #tpu.core_type<tc>, window_params = [{transform_indices = @transform_0, window_bounds = array<i64: 2, 3>}, {transform_indices = @transform_1, window_bounds = array<i64: 2, 3>}, {transform_indices = @transform_2, window_bounds = array<i64: 1, 2>}]} {
    %c0 = arith.constant 0 : index
    %c0_0 = arith.constant 0 : index
    %0 = vector.load %arg1[%c0, %c0_0] : memref<2x3xf32, #tpu.memory_space<vmem>>, vector<2x3xf32>
    %c0_1 = arith.constant 0 : index
    %c0_2 = arith.constant 0 : index
    %1 = vector.load %arg2[%c0_1, %c0_2] : memref<2x3xf32, #tpu.memory_space<vmem>>, vector<2x3xf32>
    %cst = arith.constant dense<0.000000e+00> : vector<2xf32>
    %2 = vector.multi_reduction <add>, %0, %cst [1] : vector<2x3xf32> to vector<2xf32>
    %3 = vector.shape_cast %2 : vector<2xf32> to vector<2x1xf32>
    %cst_3 = arith.constant 0.333333343 : f32
    %4 = vector.broadcast %cst_3 : f32 to vector<2x1xf32>
    %5 = arith.mulf %3, %4 : vector<2x1xf32>
    %cst_4 = arith.constant dense<0.000000e+00> : vector<2xf32>
    %6 = vector.multi_reduction <add>, %1, %cst_4 [1] : vector<2x3xf32> to vector<2xf32>
    %7 = vector.shape_cast %6 : vector<2xf32> to vector<2x1xf32>
    %cst_5 = arith.constant 0.333333343 : f32
    %8 = vector.broadcast %cst_5 : f32 to vector<2x1xf32>
    %9 = arith.mulf %7, %8 : vector<2x1xf32>
    %10 = vector.broadcast %5 : vector<2x1xf32> to vector<2x3xf32>
    %11 = arith.subf %0, %10 : vector<2x3xf32>
    %12 = vector.broadcast %9 : vector<2x1xf32> to vector<2x3xf32>
    %13 = arith.subf %1, %12 : vector<2x3xf32>
    %14 = arith.mulf %11, %13 : vector<2x3xf32>
    %cst_6 = arith.constant dense<0.000000e+00> : vector<2xf32>
    %15 = vector.multi_reduction <add>, %14, %cst_6 [1] : vector<2x3xf32> to vector<2xf32>
    %16 = arith.mulf %11, %11 : vector<2x3xf32>
    %cst_7 = arith.constant dense<0.000000e+00> : vector<2xf32>
    %17 = vector.multi_reduction <add>, %16, %cst_7 [1] : vector<2x3xf32> to vector<2xf32>
    %18 = arith.mulf %13, %13 : vector<2x3xf32>
    %cst_8 = arith.constant dense<0.000000e+00> : vector<2xf32>
    %19 = vector.multi_reduction <add>, %18, %cst_8 [1] : vector<2x3xf32> to vector<2xf32>
    %20 = arith.mulf %17, %19 : vector<2xf32>
    %21 = math.sqrt %20 : vector<2xf32>
    %cst_9 = arith.constant 9.99999974E-5 : f32
    %22 = vector.broadcast %cst_9 : f32 to vector<2xf32>
    %23 = arith.addf %21, %22 : vector<2xf32>
    %24 = tpu.reciprocal %23 : vector<2xf32> -> vector<2xf32>
    %25 = arith.mulf %15, %24 : vector<2xf32>
    %26 = vector.shape_cast %25 : vector<2xf32> to vector<1x2xf32>
    %c0_10 = arith.constant 0 : index
    %c0_11 = arith.constant 0 : index
    %27 = vector.load %arg3[%c0_10, %c0_11] : memref<1x2xf32, #tpu.memory_space<vmem>>, vector<1x2xf32>
    tpu.vector_store %arg3[%c0_10, %c0_11], %26 {strides = array<i32>} : memref<1x2xf32, #tpu.memory_space<vmem>>, vector<1x2xf32>,
    return
  }
  func.func @transform_0(%arg0: i32) -> (i32, i32) {
    %c0_i32 = arith.constant 0 : i32
    %c0_i32_0 = arith.constant 0 : i32
    return %arg0, %c0_i32 : i32, i32
  }
  func.func @transform_1(%arg0: i32) -> (i32, i32) {
    %c0_i32 = arith.constant 0 : i32
    %c0_i32_0 = arith.constant 0 : i32
    return %arg0, %c0_i32 : i32, i32
  }
  func.func @transform_2(%arg0: i32) -> (i32, i32) {
    %c0_i32 = arith.constant 0 : i32
    %c0_i32_0 = arith.constant 0 : i32
    return %arg0, %c0_i32 : i32, i32
  }
}

</mosaic_0001>

<bundles_post_ra>
// kernel: tpu_custom_call.1
= control target key start
LH: loop header
LB: loop body
LE: loop exit
PB: predicated region body
PF: predicated region fallthrough
CT: control target
= control target key end

     0   :  { %7 = vsyncpa [#allocation3], 0  ;;  %s203_s0 = inlined_call_operand.hbm [shape: f32[2,3], index: 0, kind: input, shape index: {}]   ;;  %s204_s1 = inlined_call_operand.hbm [shape: f32[2,3], index: 1, kind: input, shape index: {}]   ;;  %s205_s2 = inlined_call_operand.hbm [shape: f32[1,2], index: 2, kind: output, shape index: {}]  }
   0x1   :  { %8 = vsyncpa [#allocation6], 0 }
   0x2   :  { %9 = vsyncpa [#allocation4], 0  ;;  %s171_s9 = smov [#allocation2]   ;;  %s172_s11 = smov [#allocation5]  }
   0x3   :  { %s16_s10 = sshll.u32 %s171_s9, 4  ;;  %s26_s12 = sshll.u32 %s172_s11, 4  ;;  %s17_s10 = int_to_ptr.vmem [resolvable:$true] %s16_s10  ;;  %s27_s12 = int_to_ptr.vmem [resolvable:$true] %s26_s12 }
   0x4   :  { %s113_s13 = scalar_lea.vmem %s17_s10, 32  ;;  %p118_p1 = scmp.lt.s32.totalorder %s17_s10, %s17_s10 }
   0x5   :  { %p114_p0 = scmp.ne.s32.totalorder %s17_s10, %s113_s13  ;;  %p119_p2 = scmp.lt.s32.totalorder %s113_s13, %s113_s13 }
   0x7   :  { %p120_p3 = por %p119_p2, %p118_p1 }
   0x9   :  { %p121_p4 = pnand %p120_p3, %p114_p0 }
   0xb   :  { %124 = shalt.err (!%p121_p4)
}
   0xc   :  { %19 = dma.hbm_to_vmem [thread:$0]  %s203_s0, 32, %s17_s10, [#allocation3]  }
   0xd   :  { %s133_s16 = scalar_lea.vmem %s27_s12, 32  ;;  %p138_p6 = scmp.lt.s32.totalorder %s27_s12, %s27_s12 }
   0xe   :  { %p134_p5 = scmp.ne.s32.totalorder %s27_s12, %s133_s16  ;;  %p139_p7 = scmp.lt.s32.totalorder %s133_s16, %s133_s16 }
  0x10   :  { %p140_p8 = por %p139_p7, %p138_p6 }
  0x12   :  { %p141_p9 = pnand %p140_p8, %p134_p5 }
  0x14   :  { %144 = shalt.err (!%p141_p9)
}
  0x15   :  { %29 = dma.hbm_to_vmem [thread:$0]  %s204_s1, 32, %s27_s12, [#allocation6]  }
  0x16   :  { %165 = dma.done.wait [#allocation3], 32  }
  0x17   :  { %166 = vsyncadd [#allocation3], 4294967264 }
  0x18   :  { %167 = dma.done.wait [#allocation6], 32  }
  0x19   :  { %168 = vsyncadd [#allocation6], 4294967264  ;;  %vm38_vm0 = vcmask 17408   ;;  %v36_v0 = vld [vmem:[#allocation2] sm:$0x3]  ;;  %v73_v25 = vlaneseq  ;;  %s173_s0 = smov [#allocation7]  }
  0x1a   :  { %v37_v1 = vld [vmem:[#allocation5] sm:$0x3]  ;;  %v39_v2 = vsel %vm38_vm0, %v36_v0, 0.0  ;;  %s88_s1 = sshll.u32 %s173_s0, 4  ;;  %vm80_vm3 = vcmask 8192   ;;  %s89_s1 = int_to_ptr.vmem [resolvable:$true] %s88_s1 }
  0x1b   :  { %40 = vadd.xlane.f32.xlu0 %v39_v2  ;;  %v43_v3 = vsel %vm38_vm0, %v37_v1, 0.0  ;;  %v74_v26 = vand.u32 127, %v73_v25  ;;  %v76_v27 = vshrl.u32 %v73_v25, 7  ;;  %s145_s19 = scalar_lea.vmem %s89_s1, 16  ;;  %s149_s20 = scalar_lea.vmem %s89_s1, 32 }
  0x1c   :  { %p146_p10 = scmp.ne.s32.totalorder %s89_s1, %s145_s19  ;;  %p150_p11 = scmp.lt.s32.totalorder %s89_s1, %s89_s1 }
  0x1d   :  { %v77_v28 = vsub.s32 %v74_v26, %v76_v27  ;;  %p151_p12 = scmp.lt.s32.totalorder %s149_s20, %s145_s19 }
  0x1f   :  { %44 = vadd.xlane.f32.xlu0 %v43_v3  ;;  %p152_p13 = por %p151_p12, %p150_p11 }
  0x21   :  { %p153_p0 = pnand %p152_p13, %p146_p10 }
  0xa4   :  { %v41_v4 = vpop.xlane.xlu0 %40 }
  0xa5   :  { %v42_v5 = vmul.f32 0.33333334, %v41_v4 }
  0xa7   :  { %v47_v6 = vsub.f32 %v36_v0, %v42_v5 }
  0xa8   :  { %v45_v7 = vpop.xlane.xlu0 %44 }
  0xa9   :  { %v46_v8 = vmul.f32 0.33333334, %v45_v7  ;;  %v53_v9 = vmul.f32 %v47_v6, %v47_v6 }
  0xab   :  { %v48_v10 = vsub.f32 %v37_v1, %v46_v8  ;;  %v54_v11 = vsel %vm38_vm0, %v53_v9, 0.0 }
  0xac   :  { %55 = vadd.xlane.f32.xlu1 %v54_v11 }
  0xad   :  { %v57_v12 = vmul.f32 %v48_v10, %v48_v10  ;;  %v49_v13 = vmul.f32 %v48_v10, %v47_v6 }
  0xaf   :  { %v58_v14 = vsel %vm38_vm0, %v57_v12, 0.0  ;;  %v50_v15 = vsel %vm38_vm0, %v49_v13, 0.0 }
  0xb0   :  { %59 = vadd.xlane.f32.xlu1 %v58_v14  ;;  %51 = vadd.xlane.f32.xlu0 %v50_v15 }
 0x135   :  { %v56_v16 = vpop.xlane.xlu1 %55 }
 0x139   :  { %v60_v17 = vpop.xlane.xlu1 %59  ;;  %v52_v30 = vpop.xlane.xlu0 %51 }
 0x13a   :  { %v61_v18 = vmul.f32 %v60_v17, %v56_v16 }
 0x13c   :  { %101 = vrsqrt.f32 %v61_v18  ;;  %vm64_vm1 = vcmp.eq.f32.partialorder %v61_v18, inf  ;;  %v67_v21 = vand.u32 2147483648, %v61_v18  ;;  %vm66_vm2 = vcmp.eq.f32.partialorder %v61_v18, 0.0 }
 0x149   :  { %v102_v19 = vpop.eup %101 }
 0x14a   :  { %v63_v20 = vmul.f32 %v102_v19, %v61_v18 }
 0x14c   :  { %v65_v22 = vsel %vm64_vm1, %v61_v18, %v63_v20 }
 0x14d   :  { %v68_v23 = vsel %vm66_vm2, %v67_v21, %v65_v22 }
 0x14e   :  { %v69_v24 = vadd.f32 0.0001, %v68_v23 }
 0x150   :  { %103 = vrcp.f32 %v69_v24 }
 0x15d   :  { %v104_v29 = vpop.eup %103 }
 0x15e   :  { %v71_v31 = vmul.f32 %v104_v29, %v52_v30 }
 0x160   :  { %v78_v32 = vrot.slane %v71_v31, %v77_v28 }
 0x162   :  { %81 = vst.msk [vmem:[#allocation7] sm:$0x1] %vm80_vm3, %v78_v32 }
 0x163   :  { %156 = shalt.err (!%p153_p0)
}
 0x164   :  { %91 = dma.vmem_to_hbm [thread:$0]  %s89_s1, 16, %s205_s2, [#allocation4]  }
 0x165   :  { %169 = dma.done.wait [#allocation4], 16  }
 0x166   :  { %170 = vsyncadd [#allocation4], 4294967280 }
 0x167   :  { %95 = vsyncpa [#allocation3], 1 }
 0x168   :  { %96 = vsyncpa [#allocation6], 1 }
 0x169   :  { %97 = vsyncpa [#allocation4], 1 }

</bundles_post_ra>
